<compile_context>
chip_gen: v7x
topology: tpu7x:2x2x1
jax: 0.10.0
libtpu: 0.0.40
codegen_flags: <defaults>
</compile_context>

<pallas_src>
import jax
import jax.numpy as jnp
from jax.experimental import pallas as pl
from jax.experimental.pallas import tpu as pltpu


def _round_up(v, m):
    return (v + m - 1) // m * m


def linear_sigmoid_kernel(x_ref, w_ref, b_ref, out_ref):
    # MXU matmul with bf16 operands, f32 accumulation.
    logits = jnp.dot(x_ref[...], w_ref[...], preferred_element_type=jnp.float32)
    # f32 epilogue (bias add on VPU, sigmoid -> EUP transcendental slot).
    logits = logits + b_ref[...]
    out_ref[...] = jax.nn.sigmoid(logits)


def linear_model_forward(x, w, b):
    """x: (..., D) float; w: (D, O) = transpose of torch's nn.Linear weight; b: (O,)."""
    orig_shape = x.shape
    D, O = w.shape
    x2d = x.reshape(-1, orig_shape[-1]).astype(jnp.float32)
    assert x2d.shape[-1] == D, "last dim of x must equal input_dim"
    B = x2d.shape[0]

    # Lane-dense padding of the contraction and output dims.
    D_pad = _round_up(D, 128)
    O_pad = _round_up(O, 128)

    # Batch tile: >=128 rows (full MXU M dim), multiple of 16 (bf16 sublane pack),
    # shrunk if a very wide D/O would blow the per-tile VMEM budget.
    TB = 256
    while TB > 128 and 2 * TB * (D_pad * 2 + O_pad * 4) > (16 << 20):
        TB //= 2
    Bp = _round_up(max(B, 1), TB)

    # Zero-pad + cast. bf16 inputs halve DMA bytes / VMEM residency; padding with
    # zeros leaves the real output columns/rows numerically unchanged.
    x_p = jnp.zeros((Bp, D_pad), jnp.bfloat16).at[:B, :D].set(x2d.astype(jnp.bfloat16))
    w_p = jnp.zeros((D_pad, O_pad), jnp.bfloat16).at[:D, :O].set(w.astype(jnp.bfloat16))
    b_p = jnp.zeros((1, O_pad), jnp.float32).at[:, :O].set(
        b.reshape(1, O).astype(jnp.float32))

    grid = (Bp // TB,)

    # Weight/bias blocks: constant index_map -> fetched once, resident across
    # the whole batch grid.  (A pl.Buffered(1) pipeline_mode would also drop
    # their second buffer; the default double buffer is negligible here.)
    in_specs = [
        pl.BlockSpec((TB, D_pad), lambda i: (i, 0)),      # x tile (double-buffered)
        pl.BlockSpec((D_pad, O_pad), lambda i: (0, 0)),   # W (resident)
        pl.BlockSpec((1, O_pad), lambda i: (0, 0)),       # b (resident)
    ]
    out_spec = pl.BlockSpec((TB, O_pad), lambda i: (i, 0))

    # VMEM budget with headroom, capped at 48 MiB (safe on v7x's 64 MiB VMEM).
    est_vmem = 2 * (TB * D_pad * 2 + D_pad * O_pad * 2 + O_pad * 4 + TB * O_pad * 4)
    vmem_limit = int(min(max(2 * est_vmem, 32 << 20), 48 << 20))

    cost = pl.CostEstimate(
        flops=2 * Bp * D_pad * O_pad,
        transcendentals=Bp * O_pad,
        bytes_accessed=Bp * D_pad * 2 + D_pad * O_pad * 2 + O_pad * 4 + Bp * O_pad * 4,
    )

    out = pl.pallas_call(
        linear_sigmoid_kernel,
        out_shape=jax.ShapeDtypeStruct((Bp, O_pad), jnp.float32),
        grid=grid,
        in_specs=in_specs,
        out_specs=out_spec,
        compiler_params=pltpu.CompilerParams(
            dimension_semantics=("parallel",),   # batch tiles are independent (megacore)
            vmem_limit_bytes=vmem_limit,
        ),
        cost_estimate=cost,
    )(x_p, w_p, b_p)

    return out[:B, :O].reshape(*orig_shape[:-1], O)


def init_params(key, input_dim, output_dim):
    """Mimics nn.Linear's uniform(-1/sqrt(fan_in), 1/sqrt(fan_in)) init.
    W is stored as (in_features, out_features) so the kernel computes x @ W + b."""
    kw, kb = jax.random.split(key)
    bound = 1.0 / float(input_dim) ** 0.5
    w = jax.random.uniform(kw, (input_dim, output_dim), jnp.float32, -bound, bound)
    b = jax.random.uniform(kb, (output_dim,), jnp.float32, -bound, bound)
    return w, b


if __name__ == "__main__":
    key = jax.random.PRNGKey(0)
    k_x, k_p = jax.random.split(key)

    batch, input_dim, output_dim = 2, 64, 8
    x = jax.random.normal(k_x, (batch, input_dim), dtype=jnp.float32)
    w, b = init_params(k_p, input_dim, output_dim)

    out = linear_model_forward(x, w, b)
    jax.block_until_ready(out)
    assert out.shape == (batch, output_dim)

    # Reference with the same bf16-rounded matmul operands the kernel uses.
    x_bf = x.astype(jnp.bfloat16).astype(jnp.float32)
    w_bf = w.astype(jnp.bfloat16).astype(jnp.float32)
    ref = jax.nn.sigmoid(x_bf @ w_bf + b)
    assert jnp.allclose(out, ref, atol=1e-4, rtol=1e-4), float(jnp.max(jnp.abs(out - ref)))

    # Sanity vs full-f32 (torch-semantics) reference; slack covers bf16 operand rounding.
    ref_f32 = jax.nn.sigmoid(x @ w + b)
    assert jnp.allclose(out, ref_f32, atol=2e-2)

    print("KERNEL_OK")
</pallas_src>

<mosaic_0001>
module attributes {stable_mosaic.version = 11 : i64} {
  func.func @linear_sigmoid_kernel(%arg0: i32, %arg1: memref<256x128xbf16, #tpu.memory_space<vmem>>, %arg2: memref<128x128xbf16, #tpu.memory_space<vmem>>, %arg3: memref<1x128xf32, #tpu.memory_space<vmem>>, %arg4: memref<256x128xf32, #tpu.memory_space<vmem>>) attributes {dimension_semantics = [#tpu.dimension_semantics<parallel>], iteration_bounds = array<i64: 1>, scalar_prefetch = 0 : i64, scratch_operands = 0 : i64, tpu.core_type = #tpu.core_type<tc>, window_params = [{transform_indices = @transform_0, window_bounds = array<i64: 256, 128>}, {pipeline_mode = #tpu.pipeline_mode<synchronous>, transform_indices = @transform_1, window_bounds = array<i64: 128, 128>}, {pipeline_mode = #tpu.pipeline_mode<synchronous>, transform_indices = @transform_2, window_bounds = array<i64: 1, 128>}, {transform_indices = @transform_3, window_bounds = array<i64: 256, 128>}]} {
    %c0 = arith.constant 0 : index
    %c0_0 = arith.constant 0 : index
    %0 = vector.load %arg1[%c0, %c0_0] : memref<256x128xbf16, #tpu.memory_space<vmem>>, vector<256x128xbf16>
    %c0_1 = arith.constant 0 : index
    %c0_2 = arith.constant 0 : index
    %1 = vector.load %arg2[%c0_1, %c0_2] : memref<128x128xbf16, #tpu.memory_space<vmem>>, vector<128x128xbf16>
    %cst = arith.constant dense<0.000000e+00> : vector<256x128xf32>
    %2 = tpu.matmul %0, %1, %cst {dimension_numbers = #tpu.dot_dimension_numbers<[1], [0], [0], [1], [0, 0, 1, 1], [], []>} : vector<256x128xbf16>, vector<128x128xbf16>, vector<256x128xf32> -> vector<256x128xf32>
    %c0_3 = arith.constant 0 : index
    %c0_4 = arith.constant 0 : index
    %3 = vector.load %arg3[%c0_3, %c0_4] : memref<1x128xf32, #tpu.memory_space<vmem>>, vector<1x128xf32>
    %4 = vector.broadcast %3 : vector<1x128xf32> to vector<256x128xf32>
    %5 = arith.addf %2, %4 : vector<256x128xf32>
    %6 = arith.negf %5 : vector<256x128xf32>
    %7 = math.exp %6 : vector<256x128xf32>
    %cst_5 = arith.constant 1.000000e+00 : f32
    %8 = vector.broadcast %cst_5 : f32 to vector<256x128xf32>
    %9 = arith.addf %8, %7 : vector<256x128xf32>
    %10 = arith.divf %8, %9 : vector<256x128xf32>
    %c0_6 = arith.constant 0 : index
    %c0_7 = arith.constant 0 : index
    %11 = vector.load %arg4[%c0_6, %c0_7] : memref<256x128xf32, #tpu.memory_space<vmem>>, vector<256x128xf32>
    tpu.vector_store %arg4[%c0_6, %c0_7], %10 {strides = array<i32>} : memref<256x128xf32, #tpu.memory_space<vmem>>, vector<256x128xf32>,
    return
  }
  func.func @transform_0(%arg0: i32) -> (i32, i32) {
    %c0_i32 = arith.constant 0 : i32
    %c0_i32_0 = arith.constant 0 : i32
    return %arg0, %c0_i32 : i32, i32
  }
  func.func @transform_1(%arg0: i32) -> (i32, i32) {
    %c0_i32 = arith.constant 0 : i32
    %c0_i32_0 = arith.constant 0 : i32
    %c0_i32_1 = arith.constant 0 : i32
    return %c0_i32, %c0_i32_0 : i32, i32
  }
  func.func @transform_2(%arg0: i32) -> (i32, i32) {
    %c0_i32 = arith.constant 0 : i32
    %c0_i32_0 = arith.constant 0 : i32
    %c0_i32_1 = arith.constant 0 : i32
    return %c0_i32, %c0_i32_0 : i32, i32
  }
  func.func @transform_3(%arg0: i32) -> (i32, i32) {
    %c0_i32 = arith.constant 0 : i32
    %c0_i32_0 = arith.constant 0 : i32
    return %arg0, %c0_i32 : i32, i32
  }
}

</mosaic_0001>

<bundles_post_ra>
// kernel: tpu_custom_call.1
= control target key start
LH: loop header
LB: loop body
LE: loop exit
PB: predicated region body
PF: predicated region fallthrough
CT: control target
= control target key end

     0   :  { %8 = vsyncpa [#allocation3], 0  ;;  %s1149_s0 = inlined_call_operand.hbm [shape: bf16[256,128], index: 0, kind: input, shape index: {}]   ;;  %s1150_s1 = inlined_call_operand.hbm [shape: bf16[128,128], index: 1, kind: input, shape index: {}]   ;;  %s1151_s2 = inlined_call_operand.vmem [shape: f32[1,128], index: 2, kind: input, shape index: {}]   ;;  %s1152_s3 = inlined_call_operand.hbm [shape: f32[256,128], index: 3, kind: output, shape index: {}]  }
   0x1   :  { %9 = vsyncpa [#allocation6], 0 }
   0x2   :  { %10 = vsyncpa [#allocation4], 0  ;;  %s1022_s12 = smov [#allocation2]   ;;  %s950_s16 = scalar_lea.hbm %s1149_s0, 2048 }
   0x3   :  { %s16_s13 = sshll.u32 %s1022_s12, 4  ;;  %p951_p0 = scmp.ne.s32.totalorder %s1149_s0, %s950_s16  ;;  %s17_s13 = int_to_ptr.vmem [resolvable:$true] %s16_s13 }
   0x4   :  { %p954_p1 = scmp.lt.u32.totalorder %s950_s16, %s1149_s0 }
   0x6   :  { %p956_p2 = pnand %p954_p1, %p951_p0 }
   0x8   :  { %959 = shalt.err (!%p956_p2)
}
   0x9   :  { %s960_s21 = scalar_lea.vmem %s17_s13, 2048  ;;  %p965_p4 = scmp.lt.s32.totalorder %s17_s13, %s17_s13 }
   0xa   :  { %p961_p3 = scmp.ne.s32.totalorder %s17_s13, %s960_s21  ;;  %p966_p5 = scmp.lt.s32.totalorder %s960_s21, %s960_s21 }
   0xc   :  { %p967_p6 = por %p966_p5, %p965_p4 }
   0xe   :  { %p968_p7 = pnand %p967_p6, %p961_p3 }
  0x10   :  { %971 = shalt.err (!%p968_p7)
}
  0x11   :  { %s1023_s22 = smov 64   ;;  %s1024_s23 = smov 4  }
  0x12   :  { %22 = dma.hbm_to_vmem [thread:$0]  %s1149_s0, 2048, %s17_s13, [#allocation3], %s1023_s22, %s1023_s22, %s1024_s23  }
  0x13   :  { %s1025_s26 = smov [#allocation5]   ;;  %s972_s30 = scalar_lea.hbm %s1150_s1, 1024 }
  0x14   :  { %s28_s27 = sshll.u32 %s1025_s26, 4  ;;  %p973_p8 = scmp.ne.s32.totalorder %s1150_s1, %s972_s30  ;;  %s29_s27 = int_to_ptr.vmem [resolvable:$true] %s28_s27 }
  0x15   :  { %p976_p9 = scmp.lt.u32.totalorder %s972_s30, %s1150_s1 }
  0x17   :  { %p978_p10 = pnand %p976_p9, %p973_p8 }
  0x19   :  { %981 = shalt.err (!%p978_p10)
}
  0x1a   :  { %s982_s8 = scalar_lea.vmem %s29_s27, 1024  ;;  %p987_p12 = scmp.lt.s32.totalorder %s29_s27, %s29_s27 }
  0x1b   :  { %p983_p11 = scmp.ne.s32.totalorder %s29_s27, %s982_s8  ;;  %p988_p13 = scmp.lt.s32.totalorder %s982_s8, %s982_s8 }
  0x1d   :  { %p989_p0 = por %p988_p13, %p987_p12 }
  0x1f   :  { %p990_p1 = pnand %p989_p0, %p983_p11 }
  0x21   :  { %993 = shalt.err (!%p990_p1)
}
  0x22   :  { %34 = dma.hbm_to_vmem [thread:$0]  %s1150_s1, 1024, %s29_s27, [#allocation6], %s1023_s22, %s1023_s22, %s1024_s23  }
  0x23   :  { %1016 = dma.done.wait [#allocation3], 2048  }
  0x24   :  { %1017 = vsyncadd [#allocation3], 4294965248 }
  0x25   :  { %1018 = dma.done.wait [#allocation6], 1024  }
  0x26   :  { %1019 = vsyncadd [#allocation6], 4294966272  ;;  %v798_v0 = vld [vmem:[#allocation5] sm:$0xff]   ;;  %v799_v1 = vld [vmem:[#allocation5 + $0x8] sm:$0xff]  }
  0x27   :  { %727 = vmatprep.subr.bf16.mxu0 %v798_v0  ;;  %775 = vmatprep.subr.bf16.mxu1 %v798_v0  ;;  %v800_v2 = vld [vmem:[#allocation5 + $0x10] sm:$0xff]   ;;  %v801_v3 = vld [vmem:[#allocation5 + $0x18] sm:$0xff]   ;;  %v806_v4 = vld [vmem:[#allocation2] sm:$0xff]  }
  0x28   :  { %728 = vmatpush3.bf16.msra.mxu0 %v798_v0  ;;  %783 = vmatpush3.bf16.msra.mxu1 %v798_v0  ;;  %v807_v5 = vld [vmem:[#allocation2 + $0x40] sm:$0xff]   ;;  %v803_v7 = vld [vmem:[#allocation5 + $0x28] sm:$0xff]   ;;  %v804_v8 = vld [vmem:[#allocation5 + $0x30] sm:$0xff]  }
  0x29   :  { %729 = vmatprep.subr.bf16.mxu0 %v799_v1  ;;  %776 = vmatprep.subr.bf16.mxu1 %v799_v1  ;;  %v802_v6 = vld [vmem:[#allocation5 + $0x20] sm:$0xff]   ;;  %v805_v9 = vld [vmem:[#allocation5 + $0x38] sm:$0xff]   ;;  %v808_v10 = vld [vmem:[#allocation2 + $0x8] sm:$0xff]  }
  0x2a   :  { %743 = vmatprep.mubr.bf16.mxu0 %v806_v4  ;;  %759 = vmatprep.mubr.bf16.mxu1 %v807_v5  ;;  %v809_v11 = vld [vmem:[#allocation2 + $0x48] sm:$0xff]   ;;  %v810_v12 = vld [vmem:[#allocation2 + $0x10] sm:$0xff]   ;;  %v812_v14 = vld [vmem:[#allocation2 + $0x18] sm:$0xff]  }
  0x2b   :  { %v811_v13 = vld [vmem:[#allocation2 + $0x50] sm:$0xff]   ;;  %v813_v15 = vld [vmem:[#allocation2 + $0x58] sm:$0xff]   ;;  %v814_v16 = vld [vmem:[#allocation2 + $0x20] sm:$0xff]  }
  0x2c   :  { %730 = vmatpush3.bf16.msra.mxu0 %v799_v1  ;;  %784 = vmatpush3.bf16.msra.mxu1 %v799_v1  ;;  %v815_v17 = vld [vmem:[#allocation2 + $0x60] sm:$0xff]   ;;  %v816_v18 = vld [vmem:[#allocation2 + $0x28] sm:$0xff]   ;;  %v818_v20 = vld [vmem:[#allocation2 + $0x30] sm:$0xff]  }
  0x2d   :  { %731 = vmatprep.subr.bf16.mxu0 %v800_v2  ;;  %777 = vmatprep.subr.bf16.mxu1 %v800_v2  ;;  %v817_v19 = vld [vmem:[#allocation2 + $0x68] sm:$0xff]   ;;  %v819_v21 = vld [vmem:[#allocation2 + $0x70] sm:$0xff]   ;;  %v820_v22 = vld [vmem:[#allocation2 + $0x38] sm:$0xff]  }
  0x2e   :  { %v821_v23 = vld [vmem:[#allocation2 + $0x78] sm:$0xff]   ;;  %v1076_v24 = vld [vmem:[%s1151_s2] ss:$0 sm:$0xff]  ;;  %s1026_s2 = smov [#allocation7]  }
  0x2f   :  { %s633_s11 = sshll.u32 %s1026_s2, 4  ;;  %s634_s11 = int_to_ptr.vmem [resolvable:$true] %s633_s11 }
  0x30   :  { %732 = vmatpush3.bf16.msra.mxu0 %v800_v2  ;;  %785 = vmatpush3.bf16.msra.mxu1 %v800_v2  ;;  %s994_s12 = scalar_lea.vmem %s634_s11, 4096  ;;  %p999_p3 = scmp.lt.s32.totalorder %s634_s11, %s634_s11 }
  0x31   :  { %733 = vmatprep.subr.bf16.mxu0 %v801_v3  ;;  %778 = vmatprep.subr.bf16.mxu1 %v801_v3  ;;  %p995_p2 = scmp.ne.s32.totalorder %s634_s11, %s994_s12  ;;  %p1000_p4 = scmp.lt.s32.totalorder %s994_s12, %s994_s12 }
  0x33   :  { %p1001_p5 = por %p1000_p4, %p999_p3 }
  0x34   :  { %734 = vmatpush3.bf16.msra.mxu0 %v801_v3  ;;  %786 = vmatpush3.bf16.msra.mxu1 %v801_v3 }
  0x35   :  { %735 = vmatprep.subr.bf16.mxu0 %v802_v6  ;;  %779 = vmatprep.subr.bf16.mxu1 %v802_v6  ;;  %p1002_p6 = pnand %p1001_p5, %p995_p2 }
  0x38   :  { %736 = vmatpush3.bf16.msra.mxu0 %v802_v6  ;;  %787 = vmatpush3.bf16.msra.mxu1 %v802_v6 }
  0x39   :  { %737 = vmatprep.subr.bf16.mxu0 %v803_v7  ;;  %780 = vmatprep.subr.bf16.mxu1 %v803_v7 }
  0x3c   :  { %738 = vmatpush3.bf16.msra.mxu0 %v803_v7  ;;  %788 = vmatpush3.bf16.msra.mxu1 %v803_v7 }
  0x3d   :  { %739 = vmatprep.subr.bf16.mxu0 %v804_v8  ;;  %781 = vmatprep.subr.bf16.mxu1 %v804_v8 }
  0x40   :  { %740 = vmatpush3.bf16.msra.mxu0 %v804_v8  ;;  %789 = vmatpush3.bf16.msra.mxu1 %v804_v8 }
  0x41   :  { %741 = vmatprep.subr.bf16.mxu0 %v805_v9  ;;  %782 = vmatprep.subr.bf16.mxu1 %v805_v9 }
  0x44   :  { %742 = vmatpush3.bf16.msra.mxu0 %v805_v9  ;;  %790 = vmatpush3.bf16.msra.mxu1 %v805_v9 }
  0x47   :  { %744 = vmatmul.mubr.bf16.vlgmr.msra.gmra.mrb[0].mxu0 %v808_v10  ;;  %760 = vmatmul.mubr.bf16.vlgmr.msra.gmra.mrb[0].mxu1 %v809_v11 }
  0x48   :  { %747 = vmatprep.mubr.bf16.mxu0 %v810_v12  ;;  %763 = vmatprep.mubr.bf16.mxu1 %v811_v13 }
  0x4f   :  { %748 = vmatmul.mubr.bf16.gmra.mrb[4].mxu0 %v812_v14  ;;  %764 = vmatmul.mubr.bf16.gmra.mrb[4].mxu1 %v813_v15 }
  0x50   :  { %751 = vmatprep.mubr.bf16.mxu0 %v814_v16  ;;  %767 = vmatprep.mubr.bf16.mxu1 %v815_v17 }
  0x57   :  { %752 = vmatmul.mubr.bf16.gmra.mrb[8].mxu0 %v816_v18  ;;  %768 = vmatmul.mubr.bf16.gmra.mrb[8].mxu1 %v817_v19 }
  0x58   :  { %755 = vmatprep.mubr.bf16.mxu0 %v818_v20  ;;  %771 = vmatprep.mubr.bf16.mxu1 %v819_v21 }
  0x5f   :  { %756 = vmatmul.mubr.bf16.gmra.mrb[12].mxu0 %v820_v22  ;;  %772 = vmatmul.mubr.bf16.gmra.mrb[12].mxu1 %v821_v23 }
 0x11a   :  { %v745_v25 = vpop.f32.mrb[0].mxu0  ;;  %v761_v26 = vpop.f32.mrb[0].mxu1 }
 0x11b   :  { %v286_v27 = vadd.f32 %v745_v25, %v1076_v24  ;;  %v350_v28 = vadd.f32 %v761_v26, %v1076_v24  ;;  %v277_v29 = vpop.f32.mrb[1].mxu0  ;;  %v341_v30 = vpop.f32.mrb[1].mxu1 }
 0x11c   :  { %v278_v31 = vadd.f32 %v1076_v24, %v277_v29  ;;  %v342_v32 = vadd.f32 %v1076_v24, %v341_v30  ;;  %v746_v33 = vpop.f32.mrb[2].mxu0  ;;  %v762_v34 = vpop.f32.mrb[2].mxu1 }
 0x11d   :  { %v673_v35 = vmul.f32 -1.442695, %v286_v27  ;;  %v689_v36 = vmul.f32 -1.442695, %v350_v28  ;;  %v289_v37 = vadd.f32 %v746_v33, %v1076_v24  ;;  %v353_v38 = vadd.f32 %v762_v34, %v1076_v24  ;;  %v280_v39 = vpop.f32.mrb[3].mxu0  ;;  %v344_v40 = vpop.f32.mrb[3].mxu1 }
 0x11e   :  { %v671_v41 = vmul.f32 -1.442695, %v278_v31  ;;  %v687_v42 = vmul.f32 -1.442695, %v342_v32  ;;  %v281_v43 = vadd.f32 %v1076_v24, %v280_v39  ;;  %v345_v44 = vadd.f32 %v1076_v24, %v344_v40 }
 0x11f   :  { %822 = vpow2.f32 %v673_v35  ;;  %v674_v45 = vmul.f32 -1.442695, %v289_v37  ;;  %v690_v46 = vmul.f32 -1.442695, %v353_v38 }
 0x120   :  { %824 = vpow2.f32 %v689_v36  ;;  %v672_v47 = vmul.f32 -1.442695, %v281_v43  ;;  %v688_v48 = vmul.f32 -1.442695, %v345_v44 }
 0x121   :  { %826 = vpow2.f32 %v671_v41 }
 0x122   :  { %828 = vpow2.f32 %v687_v42  ;;  %v749_v49 = vpop.f32.mrb[4].mxu0  ;;  %v765_v50 = vpop.f32.mrb[4].mxu1 }
 0x123   :  { %830 = vpow2.f32 %v674_v45  ;;  %v302_v51 = vadd.f32 %v749_v49, %v1076_v24  ;;  %v366_v52 = vadd.f32 %v765_v50, %v1076_v24  ;;  %v293_v53 = vpop.f32.mrb[5].mxu0  ;;  %v357_v54 = vpop.f32.mrb[5].mxu1 }
 0x124   :  { %832 = vpow2.f32 %v690_v46  ;;  %v294_v55 = vadd.f32 %v1076_v24, %v293_v53  ;;  %v358_v56 = vadd.f32 %v1076_v24, %v357_v54  ;;  %v750_v57 = vpop.f32.mrb[6].mxu0  ;;  %v766_v58 = vpop.f32.mrb[6].mxu1 }
 0x125   :  { %834 = vpow2.f32 %v672_v47  ;;  %v677_v59 = vmul.f32 -1.442695, %v302_v51  ;;  %v693_v60 = vmul.f32 -1.442695, %v366_v52  ;;  %v305_v61 = vadd.f32 %v750_v57, %v1076_v24  ;;  %v296_v62 = vpop.f32.mrb[7].mxu0  ;;  %v360_v63 = vpop.f32.mrb[7].mxu1 }
 0x126   :  { %836 = vpow2.f32 %v688_v48  ;;  %v675_v0 = vmul.f32 -1.442695, %v294_v55  ;;  %v691_v1 = vmul.f32 -1.442695, %v358_v56  ;;  %v369_v29 = vadd.f32 %v766_v58, %v1076_v24 }
 0x127   :  { %838 = vpow2.f32 %v677_v59  ;;  %v678_v2 = vmul.f32 -1.442695, %v305_v61  ;;  %v297_v32 = vadd.f32 %v1076_v24, %v296_v62  ;;  %v361_v36 = vadd.f32 %v1076_v24, %v360_v63 }
 0x128   :  { %840 = vpow2.f32 %v693_v60  ;;  %v694_v46 = vmul.f32 -1.442695, %v369_v29 }
 0x129   :  { %v823_v3 = vpop.eup %822  ;;  %842 = vpow2.f32 %v675_v0  ;;  %v676_v52 = vmul.f32 -1.442695, %v297_v32  ;;  %v692_v56 = vmul.f32 -1.442695, %v361_v36 }
 0x12a   :  { %v825_v4 = vpop.eup %824  ;;  %v502_v5 = vadd.f32 1.0, %v823_v3  ;;  %844 = vpow2.f32 %v691_v1  ;;  %v753_v6 = vpop.f32.mrb[8].mxu0 }
 0x12b   :  { %v769_v7 = vpop.f32.mrb[8].mxu1  ;;  %v827_v8 = vpop.eup %826  ;;  %v518_v9 = vadd.f32 1.0, %v825_v4  ;;  %846 = vpow2.f32 %v678_v2  ;;  %v318_v41 = vadd.f32 %v753_v6, %v1076_v24 }
 0x12c   :  { %v309_v10 = vpop.f32.mrb[9].mxu0  ;;  %v373_v11 = vpop.f32.mrb[9].mxu1  ;;  %848 = vrcp.f32 %v502_v5  ;;  %v500_v13 = vadd.f32 1.0, %v827_v8  ;;  %v382_v47 = vadd.f32 %v769_v7, %v1076_v24 }
 0x12d   :  { %v829_v12 = vpop.eup %828  ;;  %v754_v14 = vpop.f32.mrb[10].mxu0  ;;  %850 = vrcp.f32 %v518_v9  ;;  %v310_v53 = vadd.f32 %v1076_v24, %v309_v10  ;;  %v374_v57 = vadd.f32 %v1076_v24, %v373_v11  ;;  %v681_v59 = vmul.f32 -1.442695, %v318_v41 }
 0x12e   :  { %v1091_v15 = vpop.f32.mrb[10].mxu1  ;;  %v831_v16 = vpop.eup %830  ;;  %v516_v17 = vadd.f32 1.0, %v829_v12  ;;  %852 = vrcp.f32 %v500_v13  ;;  %v321_v60 = vadd.f32 %v754_v14, %v1076_v24  ;;  %v697_v62 = vmul.f32 -1.442695, %v382_v47 }
 0x12f   :  { %v1093_v18 = vpop.f32.mrb[11].mxu0  ;;  %v833_v19 = vpop.eup %832  ;;  %v503_v20 = vadd.f32 1.0, %v831_v16  ;;  %v385_v63 = vadd.f32 %v1091_v15, %v1076_v24  ;;  %v679_v1 = vmul.f32 -1.442695, %v310_v53  ;;  %v695_v4 = vmul.f32 -1.442695, %v374_v57 }
 0x130   :  { %v1095_v21 = vpop.f32.mrb[11].mxu1  ;;  %v835_v22 = vpop.eup %834  ;;  %854 = vrcp.f32 %v516_v17  ;;  %v519_v23 = vadd.f32 1.0, %v833_v19  ;;  %v313_v2 = vadd.f32 %v1076_v24, %v1093_v18  ;;  %v682_v7 = vmul.f32 -1.442695, %v321_v60 }
 0x131   :  { %v837_v25 = vpop.eup %836  ;;  %856 = vrcp.f32 %v503_v20  ;;  %v501_v26 = vadd.f32 1.0, %v835_v22  ;;  %v377_v5 = vadd.f32 %v1076_v24, %v1095_v21  ;;  %v698_v10 = vmul.f32 -1.442695, %v385_v63 }
 0x132   :  { %v839_v27 = vpop.eup %838  ;;  %858 = vrcp.f32 %v519_v23  ;;  %v517_v28 = vadd.f32 1.0, %v837_v25  ;;  %v757_v33 = vpop.f32.mrb[12].mxu0  ;;  %v680_v13 = vmul.f32 -1.442695, %v313_v2 }
 0x133   :  { %v841_v30 = vpop.eup %840  ;;  %860 = vrcp.f32 %v501_v26  ;;  %v506_v31 = vadd.f32 1.0, %v839_v27  ;;  %v773_v37 = vpop.f32.mrb[12].mxu1  ;;  %v334_v8 = vadd.f32 %v757_v33, %v1076_v24  ;;  %v696_v15 = vmul.f32 -1.442695, %v377_v5 }
 0x134   :  { %v843_v34 = vpop.eup %842  ;;  %862 = vrcp.f32 %v517_v28  ;;  %v522_v35 = vadd.f32 1.0, %v841_v30  ;;  %v1100_v38 = vpop.f32.mrb[13].mxu0  ;;  %v398_v11 = vadd.f32 %v773_v37, %v1076_v24 }
 0x135   :  { %v845_v39 = vpop.eup %844  ;;  %864 = vrcp.f32 %v506_v31  ;;  %v504_v40 = vadd.f32 1.0, %v843_v34  ;;  %v1103_v42 = vpop.f32.mrb[13].mxu1  ;;  %v685_v17 = vmul.f32 -1.442695, %v334_v8 }
 0x136   :  { %v1105_v43 = vpop.f32.mrb[14].mxu0  ;;  %v847_v44 = vpop.eup %846  ;;  %866 = vrcp.f32 %v522_v35  ;;  %v520_v45 = vadd.f32 1.0, %v845_v39  ;;  %v701_v19 = vmul.f32 -1.442695, %v398_v11 }
 0x137   :  { %v1108_v48 = vpop.f32.mrb[14].mxu1  ;;  %v1110_v49 = vpop.f32.mrb[15].mxu0  ;;  %868 = vrcp.f32 %v504_v40  ;;  %v507_v51 = vadd.f32 1.0, %v847_v44  ;;  %v326_v40 = vadd.f32 %v1076_v24, %v1100_v38 }
 0x138   :  { %v849_v50 = vpop.eup %848  ;;  %v1113_v54 = vpop.f32.mrb[15].mxu1  ;;  %870 = vrcp.f32 %v520_v45  ;;  %v390_v45 = vadd.f32 %v1076_v24, %v1103_v42  ;;  %v401_v53 = vadd.f32 %v1108_v48, %v1076_v24  ;;  %v329_v57 = vadd.f32 %v1076_v24, %v1110_v49 }
 0x139   :  { %v851_v55 = vpop.eup %850  ;;  %598 = vst [vmem:[#allocation7 + $0x10] sm:$0xff] %v849_v50  ;;  %872 = vrcp.f32 %v507_v51  ;;  %v337_v50 = vadd.f32 %v1105_v43, %v1076_v24  ;;  %v393_v43 = vadd.f32 %v1076_v24, %v1113_v54 }
 0x13a   :  { %v853_v58 = vpop.eup %852  ;;  %614 = vst [vmem:[#allocation7 + $0x90] sm:$0xff] %v851_v55  ;;  %874 = vpow2.f32 %v694_v46  ;;  %v702_v48 = vmul.f32 -1.442695, %v401_v53 }
 0x13b   :  { %v855_v61 = vpop.eup %854  ;;  %596 = vst [vmem:[#allocation7] sm:$0xff] %v853_v58  ;;  %876 = vpow2.f32 %v676_v52 }
 0x13c   :  { %v857_v0 = vpop.eup %856  ;;  %612 = vst [vmem:[#allocation7 + $0x80] sm:$0xff] %v855_v61  ;;  %878 = vpow2.f32 %v692_v56  ;;  %v683_v56 = vmul.f32 -1.442695, %v326_v40  ;;  %v686_v61 = vmul.f32 -1.442695, %v337_v50 }
 0x13d   :  { %v859_v3 = vpop.eup %858  ;;  %599 = vst [vmem:[#allocation7 + $0x18] sm:$0xff] %v857_v0  ;;  %880 = vpow2.f32 %v681_v59  ;;  %v699_v59 = vmul.f32 -1.442695, %v390_v45  ;;  %v684_v0 = vmul.f32 -1.442695, %v329_v57 }
 0x13e   :  { %v861_v6 = vpop.eup %860  ;;  %615 = vst [vmem:[#allocation7 + $0x98] sm:$0xff] %v859_v3  ;;  %882 = vpow2.f32 %v697_v62 }
 0x13f   :  { %v863_v9 = vpop.eup %862  ;;  %597 = vst [vmem:[#allocation7 + $0x8] sm:$0xff] %v861_v6  ;;  %884 = vpow2.f32 %v679_v1  ;;  %v700_v1 = vmul.f32 -1.442695, %v393_v43 }
 0x140   :  { %v865_v12 = vpop.eup %864  ;;  %613 = vst [vmem:[#allocation7 + $0x88] sm:$0xff] %v863_v9  ;;  %886 = vpow2.f32 %v695_v4 }
 0x141   :  { %v867_v14 = vpop.eup %866  ;;  %602 = vst [vmem:[#allocation7 + $0x30] sm:$0xff] %v865_v12  ;;  %888 = vpow2.f32 %v682_v7 }
 0x142   :  { %v869_v16 = vpop.eup %868  ;;  %618 = vst [vmem:[#allocation7 + $0xb0] sm:$0xff] %v867_v14  ;;  %890 = vpow2.f32 %v698_v10 }
 0x143   :  { %v871_v18 = vpop.eup %870  ;;  %600 = vst [vmem:[#allocation7 + $0x20] sm:$0xff] %v869_v16  ;;  %892 = vpow2.f32 %v680_v13 }
 0x144   :  { %v873_v20 = vpop.eup %872  ;;  %616 = vst [vmem:[#allocation7 + $0xa0] sm:$0xff] %v871_v18  ;;  %894 = vpow2.f32 %v696_v15 }
 0x145   :  { %v875_v21 = vpop.eup %874  ;;  %603 = vst [vmem:[#allocation7 + $0x38] sm:$0xff] %v873_v20  ;;  %896 = vpow2.f32 %v685_v17 }
 0x146   :  { %v877_v22 = vpop.eup %876  ;;  %v523_v23 = vadd.f32 1.0, %v875_v21  ;;  %898 = vpow2.f32 %v701_v19 }
 0x147   :  { %v879_v25 = vpop.eup %878  ;;  %v505_v26 = vadd.f32 1.0, %v877_v22 }
 0x148   :  { %v881_v27 = vpop.eup %880  ;;  %900 = vrcp.f32 %v523_v23  ;;  %v521_v28 = vadd.f32 1.0, %v879_v25 }
 0x149   :  { %v883_v29 = vpop.eup %882  ;;  %902 = vrcp.f32 %v505_v26  ;;  %v510_v30 = vadd.f32 1.0, %v881_v27 }
 0x14a   :  { %v885_v31 = vpop.eup %884  ;;  %904 = vrcp.f32 %v521_v28  ;;  %v526_v32 = vadd.f32 1.0, %v883_v29 }
 0x14b   :  { %v887_v33 = vpop.eup %886  ;;  %906 = vrcp.f32 %v510_v30  ;;  %v508_v34 = vadd.f32 1.0, %v885_v31 }
 0x14c   :  { %v889_v35 = vpop.eup %888  ;;  %908 = vrcp.f32 %v526_v32  ;;  %v524_v36 = vadd.f32 1.0, %v887_v33 }
 0x14d   :  { %v891_v37 = vpop.eup %890  ;;  %910 = vrcp.f32 %v508_v34  ;;  %v511_v39 = vadd.f32 1.0, %v889_v35 }
 0x14e   :  { %v893_v41 = vpop.eup %892  ;;  %912 = vrcp.f32 %v524_v36  ;;  %v527_v44 = vadd.f32 1.0, %v891_v37 }
 0x14f   :  { %v895_v46 = vpop.eup %894  ;;  %914 = vrcp.f32 %v511_v39  ;;  %v509_v47 = vadd.f32 1.0, %v893_v41 }
 0x150   :  { %v897_v51 = vpop.eup %896  ;;  %916 = vrcp.f32 %v527_v44  ;;  %v525_v52 = vadd.f32 1.0, %v895_v46 }
 0x151   :  { %v899_v55 = vpop.eup %898  ;;  %918 = vrcp.f32 %v509_v47  ;;  %v514_v38 = vadd.f32 1.0, %v897_v51 }
 0x152   :  { %v901_v42 = vpop.eup %900  ;;  %920 = vrcp.f32 %v525_v52  ;;  %v530_v58 = vadd.f32 1.0, %v899_v55 }
 0x153   :  { %v903_v60 = vpop.eup %902  ;;  %619 = vst [vmem:[#allocation7 + $0xb8] sm:$0xff] %v901_v42  ;;  %922 = vrcp.f32 %v514_v38 }
 0x154   :  { %v905_v62 = vpop.eup %904  ;;  %601 = vst [vmem:[#allocation7 + $0x28] sm:$0xff] %v903_v60  ;;  %924 = vrcp.f32 %v530_v58 }
 0x155   :  { %v907_v63 = vpop.eup %906  ;;  %617 = vst [vmem:[#allocation7 + $0xa8] sm:$0xff] %v905_v62  ;;  %926 = vpow2.f32 %v683_v56 }
 0x156   :  { %v909_v49 = vpop.eup %908  ;;  %606 = vst [vmem:[#allocation7 + $0x50] sm:$0xff] %v907_v63  ;;  %928 = vpow2.f32 %v699_v59 }
 0x157   :  { %v911_v2 = vpop.eup %910  ;;  %622 = vst [vmem:[#allocation7 + $0xd0] sm:$0xff] %v909_v49  ;;  %930 = vpow2.f32 %v686_v61 }
 0x158   :  { %v913_v24 = vpop.eup %912  ;;  %604 = vst [vmem:[#allocation7 + $0x40] sm:$0xff] %v911_v2  ;;  %932 = vpow2.f32 %v702_v48 }
 0x159   :  { %v915_v54 = vpop.eup %914  ;;  %620 = vst [vmem:[#allocation7 + $0xc0] sm:$0xff] %v913_v24  ;;  %934 = vpow2.f32 %v684_v0 }
 0x15a   :  { %v917_v3 = vpop.eup %916  ;;  %607 = vst [vmem:[#allocation7 + $0x58] sm:$0xff] %v915_v54  ;;  %936 = vpow2.f32 %v700_v1 }
 0x15b   :  { %v919_v4 = vpop.eup %918  ;;  %623 = vst [vmem:[#allocation7 + $0xd8] sm:$0xff] %v917_v3 }
 0x15c   :  { %v921_v5 = vpop.eup %920  ;;  %605 = vst [vmem:[#allocation7 + $0x48] sm:$0xff] %v919_v4 }
 0x15d   :  { %v923_v6 = vpop.eup %922  ;;  %621 = vst [vmem:[#allocation7 + $0xc8] sm:$0xff] %v921_v5 }
 0x15e   :  { %v925_v7 = vpop.eup %924  ;;  %610 = vst [vmem:[#allocation7 + $0x70] sm:$0xff] %v923_v6 }
 0x15f   :  { %v927_v8 = vpop.eup %926  ;;  %626 = vst [vmem:[#allocation7 + $0xf0] sm:$0xff] %v925_v7 }
 0x160   :  { %v929_v9 = vpop.eup %928  ;;  %v512_v10 = vadd.f32 1.0, %v927_v8 }
 0x161   :  { %v931_v11 = vpop.eup %930  ;;  %v528_v12 = vadd.f32 1.0, %v929_v9 }
 0x162   :  { %v933_v13 = vpop.eup %932  ;;  %938 = vrcp.f32 %v512_v10  ;;  %v515_v14 = vadd.f32 1.0, %v931_v11 }
 0x163   :  { %v935_v15 = vpop.eup %934  ;;  %940 = vrcp.f32 %v528_v12  ;;  %v531_v16 = vadd.f32 1.0, %v933_v13 }
 0x164   :  { %v937_v17 = vpop.eup %936  ;;  %942 = vrcp.f32 %v515_v14  ;;  %v513_v18 = vadd.f32 1.0, %v935_v15 }
 0x165   :  { %944 = vrcp.f32 %v531_v16  ;;  %v529_v19 = vadd.f32 1.0, %v937_v17 }
 0x166   :  { %946 = vrcp.f32 %v513_v18 }
 0x167   :  { %948 = vrcp.f32 %v529_v19 }
 0x16c   :  { %v939_v20 = vpop.eup %938 }
 0x16d   :  { %v941_v21 = vpop.eup %940  ;;  %608 = vst [vmem:[#allocation7 + $0x60] sm:$0xff] %v939_v20 }
 0x16e   :  { %v943_v22 = vpop.eup %942  ;;  %624 = vst [vmem:[#allocation7 + $0xe0] sm:$0xff] %v941_v21 }
 0x16f   :  { %v945_v23 = vpop.eup %944  ;;  %611 = vst [vmem:[#allocation7 + $0x78] sm:$0xff] %v943_v22 }
 0x170   :  { %v947_v25 = vpop.eup %946  ;;  %627 = vst [vmem:[#allocation7 + $0xf8] sm:$0xff] %v945_v23 }
 0x171   :  { %v949_v26 = vpop.eup %948  ;;  %609 = vst [vmem:[#allocation7 + $0x68] sm:$0xff] %v947_v25 }
 0x172   :  { %625 = vst [vmem:[#allocation7 + $0xe8] sm:$0xff] %v949_v26 }
 0x173   :  { %1005 = shalt.err (!%p1002_p6)
}
 0x174   :  { %s1006_s15 = scalar_lea.hbm %s1152_s3, 4096 }
 0x175   :  { %p1007_p7 = scmp.ne.s32.totalorder %s1152_s3, %s1006_s15  ;;  %p1010_p8 = scmp.lt.u32.totalorder %s1006_s15, %s1152_s3 }
 0x177   :  { %p1012_p9 = pnand %p1010_p8, %p1007_p7 }
 0x179   :  { %1015 = shalt.err (!%p1012_p9)
}
 0x17a   :  { %s1027_s20 = smov 128   ;;  %s1028_s21 = smov 8  }
 0x17b   :  { %639 = dma.vmem_to_hbm [thread:$0]  %s634_s11, 4096, %s1152_s3, [#allocation4], %s1027_s20, %s1027_s20, %s1028_s21  }
 0x17c   :  { %1020 = dma.done.wait [#allocation4], 4096  }
 0x17d   :  { %1021 = vsyncadd [#allocation4], 4294963200 }
 0x17e   :  { %643 = vsyncpa [#allocation3], 1 }
 0x17f   :  { %644 = vsyncpa [#allocation6], 1 }
 0x180   :  { %645 = vsyncpa [#allocation4], 1 }

</bundles_post_ra>
